<compile_context>
chip_gen: v7x
topology: tpu7x:2x2x1
jax: 0.10.0
libtpu: 0.0.40
codegen_flags: <defaults>
</compile_context>

<pallas_src>
import functools

import jax
import jax.numpy as jnp
from jax.experimental import pallas as pl
from jax.experimental.pallas import tpu as pltpu


# --------------------------------------------------------------------------
# helpers
# --------------------------------------------------------------------------

def _vmem_capacity_bytes():
    try:
        info = pltpu.get_tpu_info()
        cap = int(getattr(info, "vmem_capacity_bytes", 0))
        if cap > 0:
            return cap
    except Exception:
        pass
    return 64 << 20  # conservative (v7x-sized) fallback


def _largest_divisor(n, mult, upper):
    """Largest d with d % mult == 0, d | n and d <= upper; fallback: n."""
    upper = min(upper, n)
    d = (upper // mult) * mult
    while d >= mult:
        if n % d == 0:
            return d
        d -= mult
    return n


def _skip_source_ids(active_bool, ids):
    """Carry the last *active* grid id forward over inactive steps.

    The Pallas pipeline does not re-issue the input DMA when a block's index
    is identical to the previous grid step's, so repeating the last active
    index across a run of inactive tiles skips their HBM input reads while
    the kernel still writes zeros to those output tiles.
    """
    last_act = jax.lax.cummax(jnp.where(active_bool, ids, -1))
    return jnp.where(last_act >= 0, last_act, ids).astype(jnp.int32)


# --------------------------------------------------------------------------
# channels_last kernel: rows = flattened (B*H*W), LN over the lane dim C
# --------------------------------------------------------------------------

def _ln_rows_kernel(in_idx_ref, flags_ref, *refs, eps, use_mask):
    # in_idx_ref : SMEM (n_tiles,) int32  (used only by the index maps)
    # flags_ref  : SMEM (n_tiles,) int32  per-tile "any active" flag
    # refs       : x (TR,C), [mask (TR,1)], w (1,C), b (1,C), out (TR,C)
    if use_mask:
        x_ref, m_ref, w_ref, b_ref, o_ref = refs
    else:
        x_ref, w_ref, b_ref, o_ref = refs
        m_ref = None
    t = pl.program_id(0)
    flag = flags_ref[t]

    @pl.when(flag == 0)
    def _():
        # Fully inactive tile: exact zeros; x/mask blocks were never fetched.
        o_ref[...] = jnp.zeros(o_ref.shape, o_ref.dtype)

    @pl.when(flag != 0)
    def _():
        x = x_ref[...].astype(jnp.float32)                    # (TR, C)
        mu = jnp.mean(x, axis=-1, keepdims=True)
        xc = x - mu
        var = jnp.mean(xc * xc, axis=-1, keepdims=True)
        y = xc * jax.lax.rsqrt(var + eps)
        y = y * w_ref[0, :].astype(jnp.float32) + b_ref[0, :].astype(jnp.float32)
        if use_mask:
            y = y * m_ref[...].astype(jnp.float32)             # (TR,1) lane bcast
        o_ref[...] = y.astype(o_ref.dtype)


def _ln_rows(x2d, m_rows, weight, bias, *, eps, use_mask, max_block_bytes=None):
    N, C = x2d.shape
    isz = x2d.dtype.itemsize
    # sublane multiple for the row dim given dtype packing (f32:8, bf16:16, i8:32)
    row_mult = max(8, 32 // max(isz, 1))

    cap = _vmem_capacity_bytes()
    mask_row_pad = 128 * 4 if use_mask else 0         # (TR,1) f32 mask pads 1->128 lanes
    per_row_vmem = C * isz * 2 + mask_row_pad          # in + out + padded mask, per row
    budget = int(cap * 0.45)                           # double-buffered block budget
    x_block_cap = max_block_bytes if max_block_bytes else min(8 << 20,
                                                              max(1 << 20, cap // 16))
    max_rows = min(N, budget // (2 * per_row_vmem),
                   max(1, x_block_cap // max(1, C * isz)))
    max_rows = max(row_mult, max_rows)
    TR = _largest_divisor(N, row_mult, max_rows)
    n_tiles = N // TR

    ids = jnp.arange(n_tiles, dtype=jnp.int32)
    if use_mask:
        tile_act = m_rows.reshape(n_tiles, TR).max(axis=1) > 0
        flags = tile_act.astype(jnp.int32)
        in_idx = _skip_source_ids(tile_act, ids)
    else:
        flags = jnp.ones((n_tiles,), jnp.int32)
        in_idx = ids

    # VMEM: double-buffered in/out/mask blocks + weight/bias + slack.
    vmem_need = 2 * TR * per_row_vmem + (4 << 20)
    vmem_limit = int(min(max(vmem_need, 16 << 20), int(cap * 0.75)))

    kernel = functools.partial(_ln_rows_kernel, eps=eps, use_mask=use_mask)

    in_specs = [pl.BlockSpec((TR, C), lambda t, ii, fl: (ii[t], 0))]
    args = [x2d]
    if use_mask:
        in_specs.append(pl.BlockSpec((TR, 1), lambda t, ii, fl: (ii[t], 0)))
        args.append(m_rows)
    wb_spec = pl.BlockSpec((1, C), lambda t, ii, fl: (0, 0))
    in_specs += [wb_spec, wb_spec]
    args += [weight.reshape(1, C), bias.reshape(1, C)]

    return pl.pallas_call(
        kernel,
        out_shape=jax.ShapeDtypeStruct((N, C), x2d.dtype),
        grid_spec=pltpu.PrefetchScalarGridSpec(
            num_scalar_prefetch=2,
            grid=(n_tiles,),
            in_specs=in_specs,
            out_specs=pl.BlockSpec((TR, C), lambda t, ii, fl: (t, 0)),
        ),
        compiler_params=pltpu.CompilerParams(
            dimension_semantics=("parallel",),
            vmem_limit_bytes=vmem_limit,
        ),
    )(in_idx, flags, *args)


# --------------------------------------------------------------------------
# channels_first kernel: blocks (TB, C, TS) over (B, C, H*W), LN over C
# (sublane axis) -> no transpose round trip in the wrapper.
# --------------------------------------------------------------------------

def _ln_cf_kernel(ib_ref, is_ref, flags_ref, *refs, eps, use_mask):
    if use_mask:
        x_ref, m_ref, w_ref, b_ref, o_ref = refs
    else:
        x_ref, w_ref, b_ref, o_ref = refs
        m_ref = None
    g = pl.program_id(0)
    flag = flags_ref[g]

    @pl.when(flag == 0)
    def _():
        o_ref[...] = jnp.zeros(o_ref.shape, o_ref.dtype)

    @pl.when(flag != 0)
    def _():
        x = x_ref[...].astype(jnp.float32)                     # (TB, C, TS)
        mu = jnp.mean(x, axis=1, keepdims=True)                # (TB, 1, TS)
        xc = x - mu
        var = jnp.mean(xc * xc, axis=1, keepdims=True)
        y = xc * jax.lax.rsqrt(var + eps)
        w = w_ref[...].astype(jnp.float32)[None, :, :]         # (1, C, 1)
        b = b_ref[...].astype(jnp.float32)[None, :, :]
        y = y * w + b
        if use_mask:
            y = y * m_ref[...].astype(jnp.float32)             # (TB, 1, TS)
        o_ref[...] = y.astype(o_ref.dtype)


def _ln_cf(x3, m_cf, weight, bias, *, eps, use_mask, max_block_bytes=None):
    B, C, S = x3.shape
    isz = x3.dtype.itemsize
    cap = _vmem_capacity_bytes()
    mask_pad = 8 * 4 if use_mask else 0           # (.,1,TS) f32 mask pads sublane 1->8
    per_col = C * isz * 2 + mask_pad              # in + out + mask per spatial column
    budget = int(cap * 0.45)
    x_block_cap = max_block_bytes if max_block_bytes else min(8 << 20,
                                                              max(1 << 20, cap // 16))
    max_cols = min(S, budget // (2 * per_col), max(1, x_block_cap // max(1, C * isz)))
    if max_cols >= S:
        # whole spatial extent fits -> batch several images per block
        TS = S
        per_batch = S * per_col
        max_tb = max(1, min(B, budget // (2 * per_batch),
                            max(1, x_block_cap // max(1, C * S * isz))))
        TB = _largest_divisor(B, 1, max_tb)
    else:
        TB = 1
        TS = _largest_divisor(S, 128, max(1, max_cols))   # lane dim: mult of 128 or S
    n_bt, n_st = B // TB, S // TS
    G = n_bt * n_st

    gids = jnp.arange(G, dtype=jnp.int32)
    if use_mask:
        act = (m_cf.reshape(n_bt, TB, n_st, TS).max(axis=(1, 3)) > 0).reshape(G)
        flags = act.astype(jnp.int32)
        src = _skip_source_ids(act, gids)
    else:
        flags = jnp.ones((G,), jnp.int32)
        src = gids
    ib_in = (src // n_st).astype(jnp.int32)
    is_in = (src % n_st).astype(jnp.int32)

    wb_pad = 2 * 2 * C * 128 * 4                      # (C,1) w/b lane-padded, x2 buffers
    vmem_need = 2 * TB * TS * per_col + wb_pad + (4 << 20)
    vmem_limit = int(min(max(vmem_need, 16 << 20), int(cap * 0.75)))

    kernel = functools.partial(_ln_cf_kernel, eps=eps, use_mask=use_mask)

    in_specs = [pl.BlockSpec((TB, C, TS), lambda g, ib, isp, fl: (ib[g], 0, isp[g]))]
    args = [x3]
    if use_mask:
        in_specs.append(
            pl.BlockSpec((TB, 1, TS), lambda g, ib, isp, fl: (ib[g], 0, isp[g])))
        args.append(m_cf)
    wb_spec = pl.BlockSpec((C, 1), lambda g, ib, isp, fl: (0, 0))
    in_specs += [wb_spec, wb_spec]
    args += [weight.reshape(C, 1), bias.reshape(C, 1)]

    return pl.pallas_call(
        kernel,
        out_shape=jax.ShapeDtypeStruct((B, C, S), x3.dtype),
        grid_spec=pltpu.PrefetchScalarGridSpec(
            num_scalar_prefetch=3,
            grid=(G,),
            in_specs=in_specs,
            out_specs=pl.BlockSpec((TB, C, TS),
                                   lambda g, ib, isp, fl: (g // n_st, 0, g % n_st)),
        ),
        compiler_params=pltpu.CompilerParams(
            dimension_semantics=("parallel",),
            vmem_limit_bytes=vmem_limit,
        ),
    )(ib_in, is_in, flags, *args)


# --------------------------------------------------------------------------
# public wrapper
# --------------------------------------------------------------------------

@functools.partial(jax.jit,
                   static_argnames=("data_format", "sparse", "eps", "block_bytes"))
def sparse_convnext_layernorm(x, cur_active, weight, bias, *,
                              data_format="channels_last", sparse=True,
                              eps=1e-6, block_bytes=None):
    """Forward of SparseConvNeXtLayerNorm.

    channels_last : x is (B, H, W, C);  channels_first: x is (B, C, H, W).
    cur_active    : (B, 1, h_m, w_m) binary active mask (the `_cur_active`
                    global of the PyTorch code); ignored if sparse=False.
    block_bytes   : optional override of the per-step input block size (tests).
    """
    if x.ndim != 4:
        # TODO(synk): plain nn.LayerNorm path for non-4D inputs (sparse=False).
        raise NotImplementedError("only 4-D inputs are supported")
    if data_format == "channels_last":
        B, H, W, C = x.shape
    elif data_format == "channels_first":
        B, C, H, W = x.shape
    else:
        raise NotImplementedError(data_format)

    use_mask = sparse and (cur_active is not None)
    m_full = None
    if use_mask:
        _, _, h_m, w_m = cur_active.shape
        if H % h_m != 0 or W % w_m != 0:
            raise ValueError("mask resolution must divide the feature map")
        rh, rw = H // h_m, W // w_m
        m_small = cur_active[:, 0] != 0                         # (B, h_m, w_m)
        m_full = jnp.repeat(jnp.repeat(m_small, rh, axis=1), rw, axis=2)  # (B,H,W)

    if data_format == "channels_last":
        x2 = x.reshape(B * H * W, C)
        m_rows = (m_full.reshape(B * H * W, 1).astype(jnp.float32)
                  if use_mask else None)
        out = _ln_rows(x2, m_rows, weight, bias, eps=eps, use_mask=use_mask,
                       max_block_bytes=block_bytes)
        return out.reshape(B, H, W, C)
    else:
        S = H * W
        x3 = x.reshape(B, C, S)
        m_cf = (m_full.reshape(B, 1, S).astype(jnp.float32)
                if use_mask else None)
        out = _ln_cf(x3, m_cf, weight, bias, eps=eps, use_mask=use_mask,
                     max_block_bytes=block_bytes)
        return out.reshape(B, C, H, W)


# --------------------------------------------------------------------------
# pure-JAX references & self-test
# --------------------------------------------------------------------------

def _reference_sparse_nhwc(x, cur_active, weight, bias, eps=1e-6):
    B, H, W, C = x.shape
    rh = H // cur_active.shape[2]
    rw = W // cur_active.shape[3]
    m = (cur_active != 0).astype(x.dtype)
    m = jnp.repeat(jnp.repeat(m, rh, axis=2), rw, axis=3)       # (B,1,H,W)
    m = jnp.transpose(m, (0, 2, 3, 1))                          # (B,H,W,1)
    mu = jnp.mean(x, axis=-1, keepdims=True)
    var = jnp.mean((x - mu) ** 2, axis=-1, keepdims=True)
    xn = (x - mu) / jnp.sqrt(var + eps) * weight + bias
    return xn * m


def _reference_dense_nhwc(x, weight, bias, eps=1e-6):
    mu = jnp.mean(x, axis=-1, keepdims=True)
    var = jnp.mean((x - mu) ** 2, axis=-1, keepdims=True)
    return (x - mu) / jnp.sqrt(var + eps) * weight + bias


if __name__ == "__main__":
    key = jax.random.PRNGKey(0)
    kx, km, kw, kb = jax.random.split(key, 4)

    B, C, H, W = 2, 32, 16, 16
    x_nhwc = jax.random.normal(kx, (B, H, W, C), jnp.float32)
    # _cur_active: binary mask at 4x-downsampled resolution (B, 1, H/4, W/4)
    cur_active = (jax.random.uniform(km, (B, 1, H // 4, W // 4)) > 0.4)
    cur_active = cur_active.astype(jnp.float32)
    # make one batch element fully inactive to exercise the DMA-skip path
    cur_active = cur_active.at[1].set(0.0)

    weight = 1.0 + 0.1 * jax.random.normal(kw, (C,), jnp.float32)
    bias = 0.1 * jax.random.normal(kb, (C,), jnp.float32)

    ref_cl = _reference_sparse_nhwc(x_nhwc, cur_active, weight, bias)

    # --- channels_last, sparse=True (small block_bytes forces several tiles
    #     so the inactive-tile input-DMA skip / index remap is exercised) ----
    out_cl = sparse_convnext_layernorm(x_nhwc, cur_active, weight, bias,
                                       data_format="channels_last",
                                       sparse=True, block_bytes=8192)
    jax.block_until_ready(out_cl)
    assert out_cl.shape == (B, H, W, C) and out_cl.dtype == jnp.float32
    assert jnp.allclose(out_cl, ref_cl, atol=1e-4, rtol=1e-4)
    assert bool(jnp.all(out_cl[1] == 0))          # fully-inactive batch -> exact zeros

    # --- channels_first, sparse=True (native NCHW kernel, no transposes) ----
    x_nchw = jnp.transpose(x_nhwc, (0, 3, 1, 2))
    out_cf = sparse_convnext_layernorm(x_nchw, cur_active, weight, bias,
                                       data_format="channels_first",
                                       sparse=True, block_bytes=8192)
    jax.block_until_ready(out_cf)
    assert out_cf.shape == (B, C, H, W)
    assert jnp.allclose(out_cf, jnp.transpose(ref_cl, (0, 3, 1, 2)),
                        atol=1e-4, rtol=1e-4)

    # --- channels_last, sparse=False (dense LN, no mask streamed) -----------
    out_dense = sparse_convnext_layernorm(x_nhwc, None, weight, bias,
                                          data_format="channels_last",
                                          sparse=False)
    jax.block_until_ready(out_dense)
    ref_dense = _reference_dense_nhwc(x_nhwc, weight, bias)
    assert jnp.allclose(out_dense, ref_dense, atol=1e-4, rtol=1e-4)

    # --- bf16 end-to-end (halves HBM traffic; LN math stays f32 in-kernel) --
    x_bf = x_nhwc.astype(jnp.bfloat16)
    out_bf = sparse_convnext_layernorm(x_bf, cur_active, weight, bias,
                                       data_format="channels_last", sparse=True)
    jax.block_until_ready(out_bf)
    assert out_bf.dtype == jnp.bfloat16
    ref_bf = _reference_sparse_nhwc(x_bf.astype(jnp.float32), cur_active,
                                    weight, bias)
    assert jnp.allclose(out_bf.astype(jnp.float32), ref_bf, atol=7e-2, rtol=7e-2)

    print("KERNEL_OK")
</pallas_src>

<mosaic_0001>
module attributes {stable_mosaic.version = 11 : i64} {
  func.func @_ln_rows_kernel(%arg0: i32, %arg1: memref<8xi32, #tpu.memory_space<smem>>, %arg2: memref<8xi32, #tpu.memory_space<smem>>, %arg3: memref<64x32xf32, #tpu.memory_space<vmem>>, %arg4: memref<64x1xf32, #tpu.memory_space<vmem>>, %arg5: memref<1x32xf32, #tpu.memory_space<vmem>>, %arg6: memref<1x32xf32, #tpu.memory_space<vmem>>, %arg7: memref<64x32xf32, #tpu.memory_space<vmem>>) attributes {dimension_semantics = [#tpu.dimension_semantics<parallel>], iteration_bounds = array<i64: 8>, scalar_prefetch = 2 : i64, scratch_operands = 0 : i64, tpu.core_type = #tpu.core_type<tc>, window_params = [{transform_indices = @transform_0, window_bounds = array<i64: 64, 32>}, {transform_indices = @transform_1, window_bounds = array<i64: 64, 1>}, {pipeline_mode = #tpu.pipeline_mode<synchronous>, transform_indices = @transform_2, window_bounds = array<i64: 1, 32>}, {pipeline_mode = #tpu.pipeline_mode<synchronous>, transform_indices = @transform_3, window_bounds = array<i64: 1, 32>}, {transform_indices = @transform_4, window_bounds = array<i64: 64, 32>}]} {
    %0 = arith.index_cast %arg0 : i32 to index
    %1 = memref.load %arg2[%0] : memref<8xi32, #tpu.memory_space<smem>>
    %c0_i32 = arith.constant 0 : i32
    %2 = arith.cmpi eq, %1, %c0_i32 : i32
    %3 = arith.extui %2 : i1 to i32
    %c0_i32_0 = arith.constant 0 : i32
    %4 = arith.cmpi ne, %3, %c0_i32_0 : i32
    scf.if %4 {
      %cst = arith.constant 0.000000e+00 : f32
      %8 = vector.broadcast %cst : f32 to vector<64x32xf32>
      %c0 = arith.constant 0 : index
      %c0_3 = arith.constant 0 : index
      %9 = vector.load %arg7[%c0, %c0_3] : memref<64x32xf32, #tpu.memory_space<vmem>>, vector<64x32xf32>
      tpu.vector_store %arg7[%c0, %c0_3], %8 {strides = array<i32>} : memref<64x32xf32, #tpu.memory_space<vmem>>, vector<64x32xf32>,
    } else {
    }
    %c0_i32_1 = arith.constant 0 : i32
    %5 = arith.cmpi ne, %1, %c0_i32_1 : i32
    %6 = arith.extui %5 : i1 to i32
    %c0_i32_2 = arith.constant 0 : i32
    %7 = arith.cmpi ne, %6, %c0_i32_2 : i32
    scf.if %7 {
      %c0 = arith.constant 0 : index
      %c0_3 = arith.constant 0 : index
      %8 = vector.load %arg3[%c0, %c0_3] : memref<64x32xf32, #tpu.memory_space<vmem>>, vector<64x32xf32>
      %cst = arith.constant dense<0.000000e+00> : vector<64xf32>
      %9 = vector.multi_reduction <add>, %8, %cst [1] : vector<64x32xf32> to vector<64xf32>
      %10 = vector.shape_cast %9 : vector<64xf32> to vector<64x1xf32>
      %cst_4 = arith.constant 3.200000e+01 : f32
      %11 = vector.broadcast %cst_4 : f32 to vector<64x1xf32>
      %12 = arith.divf %10, %11 : vector<64x1xf32>
      %13 = vector.broadcast %12 : vector<64x1xf32> to vector<64x32xf32>
      %14 = arith.subf %8, %13 : vector<64x32xf32>
      %15 = arith.mulf %14, %14 : vector<64x32xf32>
      %cst_5 = arith.constant dense<0.000000e+00> : vector<64xf32>
      %16 = vector.multi_reduction <add>, %15, %cst_5 [1] : vector<64x32xf32> to vector<64xf32>
      %17 = vector.shape_cast %16 : vector<64xf32> to vector<64x1xf32>
      %cst_6 = arith.constant 3.200000e+01 : f32
      %18 = vector.broadcast %cst_6 : f32 to vector<64x1xf32>
      %19 = arith.divf %17, %18 : vector<64x1xf32>
      %cst_7 = arith.constant 9.99999997E-7 : f32
      %20 = vector.broadcast %cst_7 : f32 to vector<64x1xf32>
      %21 = arith.addf %19, %20 : vector<64x1xf32>
      %22 = math.rsqrt %21 : vector<64x1xf32>
      %23 = vector.broadcast %22 : vector<64x1xf32> to vector<64x32xf32>
      %24 = arith.mulf %14, %23 : vector<64x32xf32>
      %c0_8 = arith.constant 0 : index
      %c0_9 = arith.constant 0 : index
      %25 = vector.load %arg5[%c0_8, %c0_9] : memref<1x32xf32, #tpu.memory_space<vmem>>, vector<1x32xf32>
      %26 = vector.shape_cast %25 : vector<1x32xf32> to vector<32xf32>
      %27 = vector.shape_cast %26 : vector<32xf32> to vector<1x32xf32>
      %28 = vector.broadcast %27 : vector<1x32xf32> to vector<64x32xf32>
      %29 = arith.mulf %24, %28 : vector<64x32xf32>
      %c0_10 = arith.constant 0 : index
      %c0_11 = arith.constant 0 : index
      %30 = vector.load %arg6[%c0_10, %c0_11] : memref<1x32xf32, #tpu.memory_space<vmem>>, vector<1x32xf32>
      %31 = vector.shape_cast %30 : vector<1x32xf32> to vector<32xf32>
      %32 = vector.shape_cast %31 : vector<32xf32> to vector<1x32xf32>
      %33 = vector.broadcast %32 : vector<1x32xf32> to vector<64x32xf32>
      %34 = arith.addf %29, %33 : vector<64x32xf32>
      %c0_12 = arith.constant 0 : index
      %c0_13 = arith.constant 0 : index
      %35 = vector.load %arg4[%c0_12, %c0_13] : memref<64x1xf32, #tpu.memory_space<vmem>>, vector<64x1xf32>
      %36 = vector.broadcast %35 : vector<64x1xf32> to vector<64x32xf32>
      %37 = arith.mulf %34, %36 : vector<64x32xf32>
      %c0_14 = arith.constant 0 : index
      %c0_15 = arith.constant 0 : index
      %38 = vector.load %arg7[%c0_14, %c0_15] : memref<64x32xf32, #tpu.memory_space<vmem>>, vector<64x32xf32>
      tpu.vector_store %arg7[%c0_14, %c0_15], %37 {strides = array<i32>} : memref<64x32xf32, #tpu.memory_space<vmem>>, vector<64x32xf32>,
    } else {
    }
    return
  }
  func.func @transform_0(%arg0: i32, %arg1: memref<8xi32, #tpu.memory_space<smem>>, %arg2: memref<8xi32, #tpu.memory_space<smem>>) -> (i32, i32) {
    %0 = arith.index_cast %arg0 : i32 to index
    %1 = memref.load %arg1[%0] : memref<8xi32, #tpu.memory_space<smem>>
    %c0_i32 = arith.constant 0 : i32
    %c0_i32_0 = arith.constant 0 : i32
    return %1, %c0_i32 : i32, i32
  }
  func.func @transform_1(%arg0: i32, %arg1: memref<8xi32, #tpu.memory_space<smem>>, %arg2: memref<8xi32, #tpu.memory_space<smem>>) -> (i32, i32) {
    %0 = arith.index_cast %arg0 : i32 to index
    %1 = memref.load %arg1[%0] : memref<8xi32, #tpu.memory_space<smem>>
    %c0_i32 = arith.constant 0 : i32
    %c0_i32_0 = arith.constant 0 : i32
    return %1, %c0_i32 : i32, i32
  }
  func.func @transform_2(%arg0: i32, %arg1: memref<8xi32, #tpu.memory_space<smem>>, %arg2: memref<8xi32, #tpu.memory_space<smem>>) -> (i32, i32) {
    %c0_i32 = arith.constant 0 : i32
    %c0_i32_0 = arith.constant 0 : i32
    %c0_i32_1 = arith.constant 0 : i32
    return %c0_i32, %c0_i32_0 : i32, i32
  }
  func.func @transform_3(%arg0: i32, %arg1: memref<8xi32, #tpu.memory_space<smem>>, %arg2: memref<8xi32, #tpu.memory_space<smem>>) -> (i32, i32) {
    %c0_i32 = arith.constant 0 : i32
    %c0_i32_0 = arith.constant 0 : i32
    %c0_i32_1 = arith.constant 0 : i32
    return %c0_i32, %c0_i32_0 : i32, i32
  }
  func.func @transform_4(%arg0: i32, %arg1: memref<8xi32, #tpu.memory_space<smem>>, %arg2: memref<8xi32, #tpu.memory_space<smem>>) -> (i32, i32) {
    %c0_i32 = arith.constant 0 : i32
    %c0_i32_0 = arith.constant 0 : i32
    return %arg0, %c0_i32 : i32, i32
  }
}

</mosaic_0001>

<bundles_post_ra>
// kernel: sparse_convnext_layernorm.1
= control target key start
LH: loop header
LB: loop body
LE: loop exit
PB: predicated region body
PF: predicated region fallthrough
CT: control target
= control target key end

     0   :  { %s1005_s0 = inlined_call_operand.vmem [shape: s32[8], index: 0, kind: input, shape index: {}]   ;;  %s1006_s2 = inlined_call_operand.vmem [shape: f32[512,32], index: 2, kind: input, shape index: {}]   ;;  %s1007_s3 = inlined_call_operand.vmem [shape: f32[512,1], index: 3, kind: input, shape index: {}]   ;;  %s1008_s4 = inlined_call_operand.vmem [shape: f32[1,32], index: 4, kind: input, shape index: {}]   ;;  %s1009_s5 = inlined_call_operand.vmem [shape: f32[1,32], index: 5, kind: input, shape index: {}]   ;;  %s1010_s6 = inlined_call_operand.hbm [shape: f32[512,32], index: 6, kind: output, shape index: {}]   ;;  %s1011_s1 = inlined_call_operand.vmem [shape: s32[8], index: 1, kind: input, shape index: {}]  }
   0x1   :  { %s11_s23 = sshll.u32 %s1005_s0, 4  ;;  %s15_s26 = sshll.u32 %s1011_s1, 4  ;;  %s12_s23 = int_to_ptr.vmem [resolvable:$true] %s11_s23  ;;  %s16_s26 = int_to_ptr.vmem [resolvable:$true] %s15_s26 }
   0x2   :  { %s643_s27 = scalar_lea.vmem %s12_s23, 16  ;;  %p648_p1 = scmp.lt.s32.totalorder %s12_s23, %s12_s23 }
   0x3   :  { %p644_p0 = scmp.ne.s32.totalorder %s12_s23, %s643_s27  ;;  %p649_p2 = scmp.lt.s32.totalorder %s643_s27, %s643_s27 }
   0x5   :  { %p650_p3 = por %p649_p2, %p648_p1 }
   0x7   :  { %p651_p4 = pnand %p650_p3, %p644_p0 }
   0x9   :  { %654 = shalt.err (!%p651_p4)  }
   0xa   :  { %s733_s28 = smov [#allocation3]   ;;  %s655_s29 = scalar_lea.vmem %s16_s26, 16 }
   0xb   :  { %14 = dma.vmem_to_smem %s12_s23, 16, %s733_s28, [#allocation2] }
   0xc   :  { %p656_p5 = scmp.ne.s32.totalorder %s16_s26, %s655_s29  ;;  %p660_p6 = scmp.lt.s32.totalorder %s16_s26, %s16_s26 }
   0xd   :  { %p661_p7 = scmp.lt.s32.totalorder %s655_s29, %s655_s29 }
   0xf   :  { %p662_p8 = por %p661_p7, %p660_p6 }
  0x11   :  { %p663_p9 = pnand %p662_p8, %p656_p5 }
  0x13   :  { %666 = shalt.err (!%p663_p9)  }
  0x14   :  { %s734_s0 = smov [#allocation4]  }
  0x15   :  { %18 = dma.vmem_to_smem %s16_s26, 16, %s734_s0, [#allocation2] }
  0x16   :  { %711 = dma.done.wait [#allocation2], 32 }
  0x17   :  { %712 = vsyncadd [#allocation2], 4294967264 }
  0x18   :  { %20 = sfence }
  0x19   :  { %21 = vsyncpa [#allocation6], 0 }
  0x1a   :  { %23 = vsyncpa [#allocation6 + $0x1], 0  ;;  %s781_s1 = smov 0   ;;  %s783_s30 = smov 0  }
  0x1b   :  { %s785_s7 = smov 0   ;;  %s787_s8 = smov 0  }
  0x1c LB: > { %s802_s9 = sadd.s32 4294967295, %s731_s8   ;;  %s561_s10 = sadd.s32 4294967294, %s731_s8   ;;  %s731_s8 = sphi %s787_s8, %s1017_s8   ;;  %s727_s7 = sphi %s785_s7, %s1016_s7   ;;  %s723_s30 = sphi %s783_s30, %s1015_s30   ;;  %s719_s1 = sphi %s781_s1, %s1014_s1  }
  0x1d   : > { %s806_s11 = sadd.s32 1, %s731_s8   ;;  %s134_s12 = sadd.s32 1, %s727_s7 }
  0x1e   : > { %s131_s13 = ssub.s32 %s731_s8, %s806_s11  ;;  %p144_p10 = scmp.ne.s32.totalorder %s727_s7, %s723_s30 }
  0x1f   : > { %p132_p11 = scmp.eq.s32.totalorder %s131_s13, 0  ;;  %p145_p12 = scmp.eq.s32.totalorder %s802_s9, 7 }
  0x20   : > { %p150_p13 = scmp.ne.s32.totalorder %s723_s30, %s719_s1  ;;  %p151_p0 = scmp.eq.s32.totalorder %s561_s10, 7 }
  0x21   : > { %s817_s14 = scalar_select %p132_p11, %s727_s7, %s134_s12  }
  0x22   : > { %p819_p1 = por %p145_p12, %p144_p10  ;;  %p823_p2 = por %p151_p0, %p150_p13 }
  0x23   : > { %p564_p3 = scmp.ge.s32.totalorder %s731_s8, 1  ;;  %p197_p4 = scmp.lt.s32.totalorder %s731_s8, 9 }
  0x25   : > { %p198_p5 = pnand %p564_p3, %p197_p4 }
  0x26   : > { %s227_s17 = sand.u32 (!%p198_p5), 1, %s723_s30   ;;  %s230_s18 = sld [smem:[#allocation3 + %s802_s9]] (!%p198_p5) }
  0x27   : > { %201 = sbr.rel (%p198_p5) target bundleno = 485 (0x1e5), region = 36  ;;  %s565_s19 = sshll.u32 (!%p198_p5), %s227_s17, 6 }
  0x28   : > { %s238_s20 = sld [smem:[#allocation3 + %s802_s9]] (!%p198_p5)  ;;  %s845_s12 = scalar_lea.vmem (!%p198_p5), [#allocation5], %s565_s19 }
  0x29   : > { %s247_s21 = sld [smem:[#allocation4 + %s802_s9]] (!%p198_p5) }
  0x2c   : > { %s566_s22 = sshll.u32 (!%p198_p5), %s230_s18, 3 }
  0x2d   : > { %p232_p6 = scmp.lt.s32.totalorder (!%p198_p5), %s566_s22, 63 }
  0x2e   : > { %s568_s23 = sshll.u32 %s238_s20, 3 }
  0x2f   : > { %p240_p7 = scmp.lt.s32.totalorder %s568_s23, 63  ;;  %s1019_s22 = smov (!%p232_p6, %s566_s22), 63 }
  0x30   : > { %s567_s24 = sshll.u32 %s1019_s22, 3  ;;  %p570_p8 = scmp.ne.s32.totalorder %s247_s21, 0 }
  0x31   : > { %s1021_s23 = smov (!%p240_p7, %s568_s23), 63  ;;  %s838_s27 = scalar_lea.vmem %s1006_s2, %s567_s24  ;;  %vm252_vm0 = vcmask (!%p570_p8), 261120   ;;  %v735_v0 = vmov (!%p570_p8), 0.0  }
  0x32   : > { %s569_s28 = sshll.u32 %s1021_s23, 3  ;;  %251 = sbr.rel (%p570_p8) target bundleno = 57 (0x39), region = 40  ;;  %253 = vst.msk [vmem:[%s845_s12] sm:$0xff] (!%p570_p8), %vm252_vm0, %v735_v0  ;;  %254 = vst.msk [vmem:[%s845_s12 + $0x8] sm:$0xff] (!%p570_p8), %vm252_vm0, %v735_v0 }
  0x33   : > { %s843_s10 = scalar_lea.vmem %s1007_s3, %s569_s28  ;;  %255 = vst.msk [vmem:[%s845_s12 + $0x10] sm:$0xff] (!%p570_p8), %vm252_vm0, %v735_v0  ;;  %256 = vst.msk [vmem:[%s845_s12 + $0x18] sm:$0xff] (!%p570_p8), %vm252_vm0, %v735_v0 }
  0x34   : > { %257 = vst.msk [vmem:[%s845_s12 + $0x20] sm:$0xff] (!%p570_p8), %vm252_vm0, %v735_v0  ;;  %258 = vst.msk [vmem:[%s845_s12 + $0x28] sm:$0xff] (!%p570_p8), %vm252_vm0, %v735_v0 }
  0x35   : > { %259 = vst.msk [vmem:[%s845_s12 + $0x30] sm:$0xff] (!%p570_p8), %vm252_vm0, %v735_v0  ;;  %260 = vst.msk [vmem:[%s845_s12 + $0x38] sm:$0xff] (!%p570_p8), %vm252_vm0, %v735_v0 }
  0x39 PF: > { %p571_p9 = scmp.eq.s32.totalorder %s247_s21, 0 }
  0x3a   : > { %v265_v1 = vld [vmem:[%s838_s27] sm:$0xff] (!%p571_p9)  ;;  %vm273_vm1 = vcmask (!%p571_p9), 261120   ;;  %v267_v2 = vld [vmem:[%s838_s27 + $0x10] sm:$0xff] (!%p571_p9)  ;;  %v266_v3 = vld [vmem:[%s838_s27 + $0x8] sm:$0xff] (!%p571_p9)  ;;  %v736_v17 = vmov (!%p571_p9), 0  }
  0x3b   : > { %264 = sbr.rel (%p571_p9) target bundleno = 460 (0x1cc), region = 44  ;;  %v274_v4 = vsel (!%p571_p9), %vm273_vm1, %v265_v1, 0.0  ;;  %v280_v5 = vsel (!%p571_p9), %vm273_vm1, %v267_v2, 0.0  ;;  %v268_v6 = vld [vmem:[%s838_s27 + $0x18] sm:$0xff] (!%p571_p9)  ;;  %v277_v7 = vsel (!%p571_p9), %vm273_vm1, %v266_v3, 0.0  ;;  %v269_v9 = vld [vmem:[%s838_s27 + $0x20] sm:$0xff] (!%p571_p9)  ;;  %626 = vset.pattern.permute.xlu1 (!%p571_p9), %v736_v17  ;;  %625 = vset.pattern.permute.xlu0 (!%p571_p9), %v736_v17 }
  0x3c   : > { %275 = vadd.xlane.f32.xlu0 (!%p571_p9), %v274_v4  ;;  %281 = vadd.xlane.f32.xlu1 (!%p571_p9), %v280_v5  ;;  %v283_v8 = vsel (!%p571_p9), %vm273_vm1, %v268_v6, 0.0  ;;  %v270_v10 = vld [vmem:[%s838_s27 + $0x28] sm:$0xff] (!%p571_p9)  ;;  %v286_v11 = vsel (!%p571_p9), %vm273_vm1, %v269_v9, 0.0  ;;  %v271_v13 = vld [vmem:[%s838_s27 + $0x30] sm:$0xff] (!%p571_p9)  ;;  %v869_v14 = vld [vmem:[%s838_s27 + $0x38] sm:$0xff] (!%p571_p9) }
  0x3d   : > { %v289_v12 = vsel (!%p571_p9), %vm273_vm1, %v270_v10, 0.0  ;;  %v292_v15 = vsel (!%p571_p9), %vm273_vm1, %v271_v13, 0.0  ;;  %v295_v16 = vsel (!%p571_p9), %vm273_vm1, %v869_v14, 0.0  ;;  %v410_v53 = vld [vmem:[%s843_s10 + $0x8] sm:$0xff] (!%p571_p9)  ;;  %v411_v54 = vld [vmem:[%s843_s10 + $0x10] sm:$0xff] (!%p571_p9)  ;;  %v409_v55 = vld [vmem:[%s843_s10] sm:$0xff] (!%p571_p9) }
  0x3e   : > { %v412_v56 = vld [vmem:[%s843_s10 + $0x18] sm:$0xff] (!%p571_p9)  ;;  %v413_v57 = vld [vmem:[%s843_s10 + $0x20] sm:$0xff] (!%p571_p9)  ;;  %v414_v58 = vld [vmem:[%s843_s10 + $0x28] sm:$0xff] (!%p571_p9) }
  0x3f   : > { %v415_v59 = vld [vmem:[%s843_s10 + $0x30] sm:$0xff] (!%p571_p9) }
  0x40   : > { %278 = vadd.xlane.f32.xlu0 (!%p571_p9), %v277_v7  ;;  %284 = vadd.xlane.f32.xlu1 (!%p571_p9), %v283_v8 }
  0x44   : > { %287 = vadd.xlane.f32.xlu0 %v286_v11  ;;  %290 = vadd.xlane.f32.xlu1 %v289_v12 }
  0x48   : > { %293 = vadd.xlane.f32.xlu0 %v292_v15  ;;  %296 = vadd.xlane.f32.xlu1 %v295_v16 }
  0xc9   : > { %v276_v18 = vpop.xlane.xlu0 %275  ;;  %v282_v19 = vpop.xlane.xlu1 %281 }
  0xca   : > { %v299_v20 = vmul.f32 0.03125, %v276_v18  ;;  %v301_v21 = vmul.f32 0.03125, %v282_v19 }
  0xcc   : > { %v874_v22 = vsub.f32 %v265_v1, %v299_v20  ;;  %v876_v23 = vsub.f32 %v267_v2, %v301_v21  ;;  %v416_v1 = vld [vmem:[%s843_s10 + $0x38] sm:$0xff] }
  0xcd   : > { %v279_v24 = vpop.xlane.xlu0 %278  ;;  %v285_v25 = vpop.xlane.xlu1 %284 }
  0xce   : > { %v300_v26 = vmul.f32 0.03125, %v279_v24  ;;  %v302_v27 = vmul.f32 0.03125, %v285_v25  ;;  %v315_v28 = vmul.f32 %v874_v22, %v874_v22  ;;  %v317_v29 = vmul.f32 %v876_v23, %v876_v23 }
  0xd0   : > { %v882_v30 = vsub.f32 %v266_v3, %v300_v26  ;;  %v884_v31 = vsub.f32 %v268_v6, %v302_v27  ;;  %v323_v32 = vsel %vm273_vm1, %v315_v28, 0.0  ;;  %v329_v35 = vsel %vm273_vm1, %v317_v29, 0.0  ;;  %v572_v26 = vld [vmem:[%s1008_s4] ss:$0 sm:$0xff] }
  0xd1   : > { %324 = vadd.xlane.f32.xlu0 %v323_v32  ;;  %v288_v33 = vpop.xlane.xlu0 %287  ;;  %v291_v34 = vpop.xlane.xlu1 %290  ;;  %v573_v29 = vld [vmem:[%s1009_s5] ss:$0 sm:$0xff] }
  0xd2   : > { %v303_v36 = vmul.f32 0.03125, %v288_v33  ;;  %v304_v37 = vmul.f32 0.03125, %v291_v34  ;;  %v316_v38 = vmul.f32 %v882_v30, %v882_v30  ;;  %v318_v39 = vmul.f32 %v884_v31, %v884_v31 }
  0xd4   : > { %v892_v40 = vsub.f32 %v269_v9, %v303_v36  ;;  %v894_v41 = vsub.f32 %v270_v10, %v304_v37  ;;  %v326_v42 = vsel %vm273_vm1, %v316_v38, 0.0  ;;  %v332_v45 = vsel %vm273_vm1, %v318_v39, 0.0 }
  0xd5   : > { %330 = vadd.xlane.f32.xlu0 %v329_v35  ;;  %327 = vadd.xlane.f32.xlu1 %v326_v42  ;;  %v294_v43 = vpop.xlane.xlu0 %293  ;;  %v297_v60 = vpop.xlane.xlu1 %296 }
  0xd6   : > { %v305_v44 = vmul.f32 0.03125, %v294_v43  ;;  %v319_v46 = vmul.f32 %v892_v40, %v892_v40  ;;  %v320_v47 = vmul.f32 %v894_v41, %v894_v41  ;;  %v306_v61 = vmul.f32 0.03125, %v297_v60 }
  0xd8   : > { %v902_v48 = vsub.f32 %v271_v13, %v305_v44  ;;  %v335_v49 = vsel %vm273_vm1, %v319_v46, 0.0  ;;  %v338_v50 = vsel %vm273_vm1, %v320_v47, 0.0  ;;  %v917_v62 = vsub.f32 %v869_v14, %v306_v61 }
  0xd9   : > { %333 = vadd.xlane.f32.xlu1 %v332_v45  ;;  %336 = vadd.xlane.f32.xlu0 %v335_v49 }
  0xda   : > { %v321_v51 = vmul.f32 %v902_v48, %v902_v48  ;;  %v322_v63 = vmul.f32 %v917_v62, %v917_v62 }
  0xdc   : > { %v341_v52 = vsel %vm273_vm1, %v321_v51, 0.0  ;;  %v344_v0 = vsel %vm273_vm1, %v322_v63, 0.0 }
  0xdd   : > { %339 = vadd.xlane.f32.xlu1 %v338_v50  ;;  %342 = vadd.xlane.f32.xlu0 %v341_v52 }
  0xee   : > { %424 = vperm.xlu1 %626, %v410_v53  }
  0xf2   : > { %429 = vperm.xlu1 %626, %v411_v54  }
  0xf3   : > { %419 = vperm.xlu0 %625, %v409_v55  }
  0xf6   : > { %434 = vperm.xlu1 %626, %v412_v56  }
  0xfa   : > { %439 = vperm.xlu1 %626, %v413_v57  }
  0xfe   : > { %444 = vperm.xlu1 %626, %v414_v58  }
 0x102   : > { %449 = vperm.xlu1 %626, %v415_v59  }
 0x126   : > { %345 = vadd.xlane.f32.xlu1 %v344_v0 }
 0x137   : > { %454 = vperm.xlu1 %626, %v416_v1  }
 0x15e   : > { %v325_v2 = vpop.xlane.xlu0 %324 }
 0x15f   : > { %v347_v3 = vmul.f32 0.03125, %v325_v2 }
 0x161   : > { %v355_v4 = vadd.f32 1e-06, %v347_v3 }
 0x162   : > { %v328_v5 = vpop.xlane.xlu1 %327  ;;  %v331_v6 = vpop.xlane.xlu0 %330 }
 0x163   : > { %627 = vrsqrt.f32 %v355_v4  ;;  %v348_v7 = vmul.f32 0.03125, %v328_v5  ;;  %v349_v8 = vmul.f32 0.03125, %v331_v6 }
 0x165   : > { %v356_v9 = vadd.f32 1e-06, %v348_v7  ;;  %v357_v10 = vadd.f32 1e-06, %v349_v8 }
 0x166   : > { %v334_v11 = vpop.xlane.xlu1 %333  ;;  %v337_v12 = vpop.xlane.xlu0 %336 }
 0x167   : > { %629 = vrsqrt.f32 %v356_v9  ;;  %v350_v13 = vmul.f32 0.03125, %v334_v11  ;;  %v351_v14 = vmul.f32 0.03125, %v337_v12 }
 0x168   : > { %631 = vrsqrt.f32 %v357_v10 }
 0x169   : > { %v358_v15 = vadd.f32 1e-06, %v350_v13  ;;  %v359_v16 = vadd.f32 1e-06, %v351_v14 }
 0x16a   : > { %v340_v17 = vpop.xlane.xlu1 %339  ;;  %v343_v18 = vpop.xlane.xlu0 %342 }
 0x16b   : > { %633 = vrsqrt.f32 %v358_v15  ;;  %v352_v19 = vmul.f32 0.03125, %v340_v17  ;;  %v353_v20 = vmul.f32 0.03125, %v343_v18 }
 0x16c   : > { %635 = vrsqrt.f32 %v359_v16 }
 0x16d   : > { %v628_v21 = vpop.eup %627  ;;  %v360_v24 = vadd.f32 1e-06, %v352_v19  ;;  %v361_v25 = vadd.f32 1e-06, %v353_v20 }
 0x16e   : > { %v425_v27 = vpop.permute.xlu1 %424  ;;  %v371_v28 = vmul.f32 %v628_v21, %v874_v22 }
 0x16f   : > { %637 = vrsqrt.f32 %v360_v24 }
 0x170   : > { %639 = vrsqrt.f32 %v361_v25  ;;  %v386_v32 = vmul.f32 %v572_v26, %v371_v28 }
 0x171   : > { %v630_v33 = vpop.eup %629 }
 0x172   : > { %v632_v34 = vpop.eup %631  ;;  %v372_v35 = vmul.f32 %v630_v33, %v882_v30  ;;  %v430_v36 = vpop.permute.xlu1 %429  ;;  %v401_v37 = vadd.f32 %v573_v29, %v386_v32 }
 0x173   : > { %v420_v38 = vpop.permute.xlu0 %419  ;;  %v373_v39 = vmul.f32 %v632_v34, %v876_v23 }
 0x174   : > { %v387_v42 = vmul.f32 %v572_v26, %v372_v35  ;;  %v457_v43 = vmul.f32 %v420_v38, %v401_v37 }
 0x175   : > { %v634_v22 = vpop.eup %633  ;;  %v388_v44 = vmul.f32 %v572_v26, %v373_v39 }
 0x176   : > { %v636_v45 = vpop.eup %635  ;;  %v402_v46 = vadd.f32 %v573_v29, %v387_v42  ;;  %465 = vst.msk [vmem:[%s845_s12] sm:$0xff] %vm273_vm1, %v457_v43  ;;  %v374_v47 = vmul.f32 %v634_v22, %v884_v31  ;;  %v435_v49 = vpop.permute.xlu1 %434 }
 0x177   : > { %v403_v50 = vadd.f32 %v573_v29, %v388_v44  ;;  %v375_v30 = vmul.f32 %v636_v45, %v892_v40 }
 0x178   : > { %v458_v51 = vmul.f32 %v425_v27, %v402_v46  ;;  %v389_v52 = vmul.f32 %v572_v26, %v374_v47 }
 0x179   : > { %v638_v23 = vpop.eup %637  ;;  %v459_v53 = vmul.f32 %v430_v36, %v403_v50  ;;  %v390_v54 = vmul.f32 %v572_v26, %v375_v30 }
 0x17a   : > { %v640_v55 = vpop.eup %639  ;;  %466 = vst.msk [vmem:[%s845_s12 + $0x8] sm:$0xff] %vm273_vm1, %v458_v51  ;;  %v404_v56 = vadd.f32 %v573_v29, %v389_v52  ;;  %v440_v57 = vpop.permute.xlu1 %439  ;;  %v376_v58 = vmul.f32 %v638_v23, %v894_v41 }
 0x17b   : > { %467 = vst.msk [vmem:[%s845_s12 + $0x10] sm:$0xff] %vm273_vm1, %v459_v53  ;;  %v405_v31 = vadd.f32 %v573_v29, %v390_v54  ;;  %v377_v40 = vmul.f32 %v640_v55, %v902_v48 }
 0x17c   : > { %v460_v59 = vmul.f32 %v435_v49, %v404_v56  ;;  %v391_v60 = vmul.f32 %v572_v26, %v376_v58 }
 0x17d   : > { %v461_v61 = vmul.f32 %v440_v57, %v405_v31  ;;  %v392_v63 = vmul.f32 %v572_v26, %v377_v40 }
 0x17e   : > { %468 = vst.msk [vmem:[%s845_s12 + $0x18] sm:$0xff] %vm273_vm1, %v460_v59  ;;  %v406_v0 = vadd.f32 %v573_v29, %v391_v60  ;;  %v445_v1 = vpop.permute.xlu1 %444 }
 0x17f   : > { %469 = vst.msk [vmem:[%s845_s12 + $0x20] sm:$0xff] %vm273_vm1, %v461_v61  ;;  %v407_v3 = vadd.f32 %v573_v29, %v392_v63 }
 0x180   : > { %v462_v2 = vmul.f32 %v445_v1, %v406_v0 }
 0x182   : > { %470 = vst.msk [vmem:[%s845_s12 + $0x28] sm:$0xff] %vm273_vm1, %v462_v2  ;;  %v450_v41 = vpop.permute.xlu1 %449 }
 0x183   : > { %v463_v4 = vmul.f32 %v450_v41, %v407_v3 }
 0x185   : > { %471 = vst.msk [vmem:[%s845_s12 + $0x30] sm:$0xff] %vm273_vm1, %v463_v4 }
 0x1b3   : > { %v346_v48 = vpop.xlane.xlu1 %345 }
 0x1b4   : > { %v354_v5 = vmul.f32 0.03125, %v346_v48 }
 0x1b6   : > { %v362_v6 = vadd.f32 1e-06, %v354_v5 }
 0x1b7   : > { %v455_v11 = vpop.permute.xlu1 %454 }
 0x1b8   : > { %641 = vrsqrt.f32 %v362_v6 }
 0x1c2   : > { %v642_v7 = vpop.eup %641 }
 0x1c3   : > { %v378_v8 = vmul.f32 %v642_v7, %v917_v62 }
 0x1c5   : > { %v393_v9 = vmul.f32 %v572_v26, %v378_v8 }
 0x1c7   : > { %v408_v10 = vadd.f32 %v573_v29, %v393_v9 }
 0x1c9   : > { %v464_v12 = vmul.f32 %v455_v11, %v408_v10 }
 0x1cb   : > { %472 = vst.msk [vmem:[%s845_s12 + $0x38] sm:$0xff] %vm273_vm1, %v464_v12 }
 0x1cc PF: > { %s579_s21 = sshll.u32 %s802_s9, 10  ;;  %s487_s25 = sshll.u32 %s845_s12, 4  ;;  %s960_s25 = int_to_ptr.vmem [resolvable:$true] %s487_s25 }
 0x1cd   : > { %s957_s24 = scalar_lea.hbm %s1010_s6, %s579_s21  ;;  %s964_s26 = scalar_lea.sflag [#allocation6], %s227_s17 }
 0x1ce   : > { %s667_s27 = scalar_lea.vmem %s960_s25, 1024  ;;  %s737_s9 = smov [#allocation5]  }
 0x1cf   : > { %p668_p10 = scmp.ne.s32.totalorder %s960_s25, %s667_s27  ;;  %s671_s28 = sshll.u32 %s737_s9, 4  ;;  %s672_s28 = int_to_ptr.vmem [resolvable:$false] %s671_s28 }
 0x1d0   : > { %s673_s29 = scalar_lea.vmem %s672_s28, 2048  ;;  %p674_p13 = scmp.lt.s32.totalorder %s960_s25, %s672_s28 }
 0x1d1   : > { %p669_p11 = pnand %p668_p10, %p819_p1  ;;  %p675_p0 = scmp.lt.s32.totalorder %s673_s29, %s667_s27 }
 0x1d3   : > { %p670_p12 = pneg %p669_p11  ;;  %p676_p3 = por %p675_p0, %p674_p13 }
 0x1d5   : > { %p677_p4 = pnand %p676_p3, %p670_p12 }
 0x1d7   : > { %680 = shalt.err (!%p677_p4)
}
 0x1d8   : > { %s681_s17 = scalar_lea.hbm %s957_s24, 1024  ;;  %s685_s12 = scalar_lea.hbm %s1010_s6, 8192 }
 0x1d9   : > { %p682_p5 = scmp.ne.s32.totalorder %s957_s24, %s681_s17  ;;  %p686_p8 = scmp.lt.u32.totalorder %s957_s24, %s1010_s6 }
 0x1da   : > { %p687_p9 = scmp.lt.u32.totalorder %s685_s12, %s681_s17  ;;  %p689_p11 = scmp.lt.u32.totalorder %s681_s17, %s957_s24 }
 0x1db   : > { %p683_p6 = pnand %p682_p5, %p819_p1 }
 0x1dc   : > { %p688_p10 = por %p687_p9, %p686_p8 }
 0x1dd   : > { %p684_p7 = pneg %p683_p6 }
 0x1de   : > { %p690_p12 = por %p689_p11, %p688_p10 }
 0x1e0   : > { %p691_p13 = pnand %p690_p12, %p684_p7 }
 0x1e2   : > { %694 = shalt.err (!%p691_p13)
}
 0x1e3   : > { %s738_s19 = smov 128   ;;  %s739_s20 = smov 8  }
 0x1e4   : > { %580 = dma.vmem_to_hbm [thread:$0]  (%p819_p1), %s960_s25, 1024, %s957_s24, %s964_s26, %s738_s19, %s738_s19, %s739_s20  }
 0x1e5 PF: > { %p586_p0 = scmp.ge.s32.totalorder %s731_s8, 2  ;;  %s502_s21 = sand.u32 1, %s719_s1  }
 0x1e6   : > { %s503_s22 = scalar_lea.sflag [#allocation6], %s502_s21 }
 0x1e7   : > { %p583_p3 = pnand %p586_p0, %p823_p2 }
 0x1e9   : > { %714 = dma.done.wait (!%p583_p3), %s503_s22, 1024  }
 0x1ea   : > { %716 = vsyncadd (!%p583_p3), %s503_s22, 4294966272  ;;  %p26_p4 = scmp.ge.s32.totalorder %s806_s11, 10   ;;  %s1014_s1 = smov %s723_s30 }
 0x1eb   : > { %s1015_s30 = smov %s727_s7  ;;  %s1016_s7 = smov %s817_s14 }
 0x1ec   : > { %s1017_s8 = smov %s806_s11  ;;  %28 = sbr.rel (!%p26_p4) target bundleno = 28 (0x1c), region = 82 }
 0x1f3   :  { %508 = vsyncpa [#allocation6], 1 }
 0x1f4   :  { %510 = vsyncpa [#allocation6 + $0x1], 1 }

</bundles_post_ra>
